<compile_context>
chip_gen: v7x
topology: tpu7x:2x2x1
jax: 0.10.0
libtpu: 0.0.40
codegen_flags: <defaults>
</compile_context>

<pallas_src>
import math

import jax
import jax.numpy as jnp
from jax.experimental import pallas as pl
from jax.experimental.pallas import tpu as pltpu

# Small, MNIST-like synthetic shapes.
B = 16           # batch
IMG = 16         # spatial (16x16 "image")
D = IMG * IMG    # flattened data dim = 256
H = 128          # hidden width
M = 16           # latent dim

OUT_LANES = 128  # lane-dense per-tile output row
HALF_LOG_2PI = 0.5 * math.log(2.0 * math.pi)

PARAM_ORDER = (
    "we1", "be1", "we2", "be2",                 # encoder trunk
    "wem", "bem", "wes", "bes",                 # mean / log_std heads (split)
    "wd1", "bd1", "wd2", "bd2", "wd3", "bd3",   # decoder
)


def _softplus(x):
    # numerically stable softplus (f32, VPU + EUP)
    return jnp.maximum(x, 0.0) + jnp.log1p(jnp.exp(-jnp.abs(x)))


def _mm(a_f32, w_bf16_ref):
    # bf16 MXU matmul with f32 accumulation; activations kept f32 elsewhere.
    return jnp.dot(a_f32.astype(jnp.bfloat16), w_bf16_ref[...],
                   preferred_element_type=jnp.float32)


def vae_elbo_kernel(x_ref, eps_ref,
                    we1, be1, we2, be2, wem, bem, wes, bes,
                    wd1, bd1, wd2, bd2, wd3, bd3,
                    o_ref):
    x_bf = x_ref[...]        # (Bt, D) bfloat16, binary {0,1} (exact)
    eps = eps_ref[...]       # (Bt, M) float32

    # ---- encoder trunk (first matmul consumes the bf16 x directly) ----
    h = jnp.maximum(jnp.dot(x_bf, we1[...], preferred_element_type=jnp.float32)
                    + be1[...], 0.0)
    h = jnp.maximum(_mm(h, we2) + be2[...], 0.0)

    # ---- split heads: mean and log_std as two contiguous (Bt, M) tiles ----
    mean = _mm(h, wem) + bem[...]
    log_std = _mm(h, wes) + bes[...]

    # ---- reparameterized sample z = mean + exp(log_std) * eps  (q.rsample()) ----
    z = mean + jnp.exp(log_std) * eps                                        # (Bt, M)

    # ---- log q(z|x) and log p(z); the 0.5*log(2*pi) constants cancel exactly
    #      in -log q + log p, and (z-mean)/std == eps by construction. ----
    q_lp = jnp.sum(-0.5 * jnp.square(eps) - log_std, axis=-1, keepdims=True)  # (Bt,1)
    p_lp = jnp.sum(-0.5 * jnp.square(z), axis=-1, keepdims=True)              # (Bt,1)

    # ---- decoder: Bernoulli(logits).log_prob(x) summed over data dims.
    #      For binary x:  x*l - softplus(l) == -softplus((1-2x)*l). ----
    hd = jnp.maximum(_mm(z, wd1) + bd1[...], 0.0)
    hd = jnp.maximum(_mm(hd, wd2) + bd2[...], 0.0)
    logits = _mm(hd, wd3) + bd3[...]                                          # (Bt, D)
    x_sign = 1.0 - 2.0 * x_bf.astype(jnp.float32)                             # +-1
    dec_lp = -jnp.sum(_softplus(x_sign * logits), axis=-1, keepdims=True)     # (Bt,1)

    # ---- in-kernel reduction: one tile-sum scalar, written lane-dense. ----
    per_sample = dec_lp - q_lp + p_lp                                         # (Bt,1)
    tile_sum = jnp.sum(per_sample, axis=0, keepdims=True)                     # (1,1)
    o_ref[...] = jnp.broadcast_to(tile_sum, (1, OUT_LANES))


def _resident_spec(shape):
    # Full-array block pinned to block index 0 -> weight stays VMEM-resident
    # across all batch tiles (Pallas skips re-DMA when the block index repeats).
    return pl.BlockSpec(shape, lambda i: (0,) * len(shape))


def vae_forward(x, eps, params, *, block_b=None):
    """Negative ELBO of the VAE for batch x, with externally supplied latent noise."""
    b = x.shape[0]
    # Binary data is exact in bf16; halves the largest per-tile input DMA.
    x_flat = x.reshape(b, -1).astype(jnp.bfloat16)
    eps = eps.astype(jnp.float32)
    d = x_flat.shape[1]
    m = eps.shape[1]

    if block_b is None:
        # One big tile up to 256 rows: fills the v6e/v7x 2x256 MXU and avoids paying
        # ~0.35us/step grid overhead for tiny batches (B=16 -> grid of 1).
        block_b = b if b <= 256 else 256
    assert b % block_b == 0, "batch must be divisible by the batch tile"
    num_tiles = b // block_b

    # bf16 weights (halve weight DMA, native MXU dtype); biases stay f32 (tiny).
    flat_params = []
    param_specs = []
    for k in PARAM_ORDER:
        p = params[k]
        p = p.astype(jnp.bfloat16) if k.startswith("w") else p.astype(jnp.float32)
        flat_params.append(p)
        param_specs.append(_resident_spec(p.shape))

    grid_spec = pltpu.PrefetchScalarGridSpec(
        num_scalar_prefetch=0,
        grid=(num_tiles,),
        in_specs=[pl.BlockSpec((block_b, d), lambda i: (i, 0)),
                  pl.BlockSpec((block_b, m), lambda i: (i, 0))] + param_specs,
        # One lane-dense row of the (replicated) tile-sum per grid step.
        out_specs=pl.BlockSpec((1, OUT_LANES), lambda i: (i, 0)),
    )

    tile_sums = pl.pallas_call(
        vae_elbo_kernel,
        out_shape=jax.ShapeDtypeStruct((num_tiles, OUT_LANES), jnp.float32),
        grid_spec=grid_spec,
        compiler_params=pltpu.CompilerParams(
            # Batch tiles are independent (per-tile sums): shards across TCs on v7x
            # when num_tiles > 1; near-zero cost when the grid is 1.
            dimension_semantics=("parallel",),
            # Explicit VMEM budget: resident weights (bf16, double-buffered) + x/eps
            # tiles + activations are well under this on every generation.
            vmem_limit_bytes=32 * 1024 * 1024),
    )(x_flat, eps, *flat_params)

    # Batch mean + negation in the wrapper (a handful of scalars).
    return -jnp.sum(tile_sums[:, 0]) / b


def init_params(key):
    """Deterministic PyTorch-style (uniform +-1/sqrt(fan_in)) initialization."""
    def linear(k, fan_in, fan_out):
        kw, kb = jax.random.split(k)
        bound = 1.0 / math.sqrt(fan_in)
        w = jax.random.uniform(kw, (fan_in, fan_out), jnp.float32, -bound, bound)
        b = jax.random.uniform(kb, (1, fan_out), jnp.float32, -bound, bound)
        return w, b

    keys = jax.random.split(key, 7)
    p = {}
    p["we1"], p["be1"] = linear(keys[0], D, H)
    p["we2"], p["be2"] = linear(keys[1], H, H)
    p["wem"], p["bem"] = linear(keys[2], H, M)   # mean head
    p["wes"], p["bes"] = linear(keys[3], H, M)   # log_std head
    p["wd1"], p["bd1"] = linear(keys[4], M, H)
    p["wd2"], p["bd2"] = linear(keys[5], H, H)
    p["wd3"], p["bd3"] = linear(keys[6], H, D)
    return p


def reference_forward(x, eps, params):
    """Pure-JAX reference mirroring the kernel's mixed precision (bf16 matmul
    inputs, f32 accumulation), keeping the full PyTorch-style log-prob math
    including the 0.5*log(2*pi) constants (they cancel in the ELBO) and the
    original x*logits - softplus(logits) Bernoulli form."""
    b = x.shape[0]
    xf = x.reshape(b, -1).astype(jnp.float32)

    def mm(a, key):
        return jnp.dot(a.astype(jnp.bfloat16), params[key].astype(jnp.bfloat16),
                       preferred_element_type=jnp.float32)

    h = jnp.maximum(mm(xf, "we1") + params["be1"], 0.0)
    h = jnp.maximum(mm(h, "we2") + params["be2"], 0.0)
    mean = mm(h, "wem") + params["bem"]
    log_std = mm(h, "wes") + params["bes"]
    std = jnp.exp(log_std)
    z = mean + std * eps
    q_lp = jnp.sum(-0.5 * ((z - mean) / std) ** 2 - log_std - HALF_LOG_2PI, axis=-1)
    p_lp = jnp.sum(-0.5 * z ** 2 - HALF_LOG_2PI, axis=-1)
    hd = jnp.maximum(mm(z, "wd1") + params["bd1"], 0.0)
    hd = jnp.maximum(mm(hd, "wd2") + params["bd2"], 0.0)
    logits = mm(hd, "wd3") + params["bd3"]
    dec_lp = jnp.sum(xf * logits - jax.nn.softplus(logits), axis=-1)
    return -jnp.mean(dec_lp - q_lp + p_lp)


if __name__ == "__main__":
    key = jax.random.PRNGKey(0)
    kx, keps, kparam = jax.random.split(key, 3)

    # Binarized MNIST-like input, shape (B, 16, 16).
    x = jax.random.bernoulli(kx, 0.5, (B, IMG, IMG)).astype(jnp.float32)
    # TODO(synk): torch.distributions rsample draws its own RNG state; here the
    # standard-normal noise for the reparameterization trick is supplied
    # explicitly for determinism.
    eps = jax.random.normal(keps, (B, M), dtype=jnp.float32)

    params = init_params(kparam)

    # Default block_b -> full batch in one tile (grid of 1) for B=16.
    neg_elbo = jax.block_until_ready(vae_forward(x, eps, params))
    ref = jax.block_until_ready(reference_forward(x, eps, params))

    assert jnp.isfinite(neg_elbo)
    assert jnp.allclose(neg_elbo, ref, rtol=2e-2, atol=2e-2), (neg_elbo, ref)
    print("KERNEL_OK")
</pallas_src>

<mosaic_0001>
module attributes {stable_mosaic.version = 11 : i64} {
  func.func @vae_elbo_kernel(%arg0: i32, %arg1: memref<16x256xbf16, #tpu.memory_space<vmem>>, %arg2: memref<16x16xf32, #tpu.memory_space<vmem>>, %arg3: memref<256x128xbf16, #tpu.memory_space<vmem>>, %arg4: memref<1x128xf32, #tpu.memory_space<vmem>>, %arg5: memref<128x128xbf16, #tpu.memory_space<vmem>>, %arg6: memref<1x128xf32, #tpu.memory_space<vmem>>, %arg7: memref<128x16xbf16, #tpu.memory_space<vmem>>, %arg8: memref<1x16xf32, #tpu.memory_space<vmem>>, %arg9: memref<128x16xbf16, #tpu.memory_space<vmem>>, %arg10: memref<1x16xf32, #tpu.memory_space<vmem>>, %arg11: memref<16x128xbf16, #tpu.memory_space<vmem>>, %arg12: memref<1x128xf32, #tpu.memory_space<vmem>>, %arg13: memref<128x128xbf16, #tpu.memory_space<vmem>>, %arg14: memref<1x128xf32, #tpu.memory_space<vmem>>, %arg15: memref<128x256xbf16, #tpu.memory_space<vmem>>, %arg16: memref<1x256xf32, #tpu.memory_space<vmem>>, %arg17: memref<1x128xf32, #tpu.memory_space<vmem>>) attributes {dimension_semantics = [#tpu.dimension_semantics<parallel>], iteration_bounds = array<i64: 1>, scalar_prefetch = 0 : i64, scratch_operands = 0 : i64, tpu.core_type = #tpu.core_type<tc>, window_params = [{transform_indices = @transform_0, window_bounds = array<i64: 16, 256>}, {transform_indices = @transform_1, window_bounds = array<i64: 16, 16>}, {pipeline_mode = #tpu.pipeline_mode<synchronous>, transform_indices = @transform_2, window_bounds = array<i64: 256, 128>}, {pipeline_mode = #tpu.pipeline_mode<synchronous>, transform_indices = @transform_3, window_bounds = array<i64: 1, 128>}, {pipeline_mode = #tpu.pipeline_mode<synchronous>, transform_indices = @transform_4, window_bounds = array<i64: 128, 128>}, {pipeline_mode = #tpu.pipeline_mode<synchronous>, transform_indices = @transform_5, window_bounds = array<i64: 1, 128>}, {pipeline_mode = #tpu.pipeline_mode<synchronous>, transform_indices = @transform_6, window_bounds = array<i64: 128, 16>}, {pipeline_mode = #tpu.pipeline_mode<synchronous>, transform_indices = @transform_7, window_bounds = array<i64: 1, 16>}, {pipeline_mode = #tpu.pipeline_mode<synchronous>, transform_indices = @transform_8, window_bounds = array<i64: 128, 16>}, {pipeline_mode = #tpu.pipeline_mode<synchronous>, transform_indices = @transform_9, window_bounds = array<i64: 1, 16>}, {pipeline_mode = #tpu.pipeline_mode<synchronous>, transform_indices = @transform_10, window_bounds = array<i64: 16, 128>}, {pipeline_mode = #tpu.pipeline_mode<synchronous>, transform_indices = @transform_11, window_bounds = array<i64: 1, 128>}, {pipeline_mode = #tpu.pipeline_mode<synchronous>, transform_indices = @transform_12, window_bounds = array<i64: 128, 128>}, {pipeline_mode = #tpu.pipeline_mode<synchronous>, transform_indices = @transform_13, window_bounds = array<i64: 1, 128>}, {pipeline_mode = #tpu.pipeline_mode<synchronous>, transform_indices = @transform_14, window_bounds = array<i64: 128, 256>}, {pipeline_mode = #tpu.pipeline_mode<synchronous>, transform_indices = @transform_15, window_bounds = array<i64: 1, 256>}, {transform_indices = @transform_16, window_bounds = array<i64: 1, 128>}]} {
    %c0 = arith.constant 0 : index
    %c0_0 = arith.constant 0 : index
    %0 = vector.load %arg1[%c0, %c0_0] : memref<16x256xbf16, #tpu.memory_space<vmem>>, vector<16x256xbf16>
    %c0_1 = arith.constant 0 : index
    %c0_2 = arith.constant 0 : index
    %1 = vector.load %arg2[%c0_1, %c0_2] : memref<16x16xf32, #tpu.memory_space<vmem>>, vector<16x16xf32>
    %c0_3 = arith.constant 0 : index
    %c0_4 = arith.constant 0 : index
    %2 = vector.load %arg3[%c0_3, %c0_4] : memref<256x128xbf16, #tpu.memory_space<vmem>>, vector<256x128xbf16>
    %cst = arith.constant dense<0.000000e+00> : vector<16x128xf32>
    %3 = tpu.matmul %0, %2, %cst {dimension_numbers = #tpu.dot_dimension_numbers<[1], [0], [0], [1], [0, 0, 1, 1], [], []>} : vector<16x256xbf16>, vector<256x128xbf16>, vector<16x128xf32> -> vector<16x128xf32>
    %c0_5 = arith.constant 0 : index
    %c0_6 = arith.constant 0 : index
    %4 = vector.load %arg4[%c0_5, %c0_6] : memref<1x128xf32, #tpu.memory_space<vmem>>, vector<1x128xf32>
    %5 = vector.broadcast %4 : vector<1x128xf32> to vector<16x128xf32>
    %6 = arith.addf %3, %5 : vector<16x128xf32>
    %cst_7 = arith.constant 0.000000e+00 : f32
    %7 = vector.broadcast %cst_7 : f32 to vector<16x128xf32>
    %8 = arith.maximumf %6, %7 : vector<16x128xf32>
    %9 = arith.truncf %8 : vector<16x128xf32> to vector<16x128xbf16>
    %c0_8 = arith.constant 0 : index
    %c0_9 = arith.constant 0 : index
    %10 = vector.load %arg5[%c0_8, %c0_9] : memref<128x128xbf16, #tpu.memory_space<vmem>>, vector<128x128xbf16>
    %cst_10 = arith.constant dense<0.000000e+00> : vector<16x128xf32>
    %11 = tpu.matmul %9, %10, %cst_10 {dimension_numbers = #tpu.dot_dimension_numbers<[1], [0], [0], [1], [0, 0, 1, 1], [], []>} : vector<16x128xbf16>, vector<128x128xbf16>, vector<16x128xf32> -> vector<16x128xf32>
    %c0_11 = arith.constant 0 : index
    %c0_12 = arith.constant 0 : index
    %12 = vector.load %arg6[%c0_11, %c0_12] : memref<1x128xf32, #tpu.memory_space<vmem>>, vector<1x128xf32>
    %13 = vector.broadcast %12 : vector<1x128xf32> to vector<16x128xf32>
    %14 = arith.addf %11, %13 : vector<16x128xf32>
    %cst_13 = arith.constant 0.000000e+00 : f32
    %15 = vector.broadcast %cst_13 : f32 to vector<16x128xf32>
    %16 = arith.maximumf %14, %15 : vector<16x128xf32>
    %17 = arith.truncf %16 : vector<16x128xf32> to vector<16x128xbf16>
    %c0_14 = arith.constant 0 : index
    %c0_15 = arith.constant 0 : index
    %18 = vector.load %arg7[%c0_14, %c0_15] : memref<128x16xbf16, #tpu.memory_space<vmem>>, vector<128x16xbf16>
    %cst_16 = arith.constant dense<0.000000e+00> : vector<16x16xf32>
    %19 = tpu.matmul %17, %18, %cst_16 {dimension_numbers = #tpu.dot_dimension_numbers<[1], [0], [0], [1], [0, 0, 1, 1], [], []>} : vector<16x128xbf16>, vector<128x16xbf16>, vector<16x16xf32> -> vector<16x16xf32>
    %c0_17 = arith.constant 0 : index
    %c0_18 = arith.constant 0 : index
    %20 = vector.load %arg8[%c0_17, %c0_18] : memref<1x16xf32, #tpu.memory_space<vmem>>, vector<1x16xf32>
    %21 = vector.broadcast %20 : vector<1x16xf32> to vector<16x16xf32>
    %22 = arith.addf %19, %21 : vector<16x16xf32>
    %23 = arith.truncf %16 : vector<16x128xf32> to vector<16x128xbf16>
    %c0_19 = arith.constant 0 : index
    %c0_20 = arith.constant 0 : index
    %24 = vector.load %arg9[%c0_19, %c0_20] : memref<128x16xbf16, #tpu.memory_space<vmem>>, vector<128x16xbf16>
    %cst_21 = arith.constant dense<0.000000e+00> : vector<16x16xf32>
    %25 = tpu.matmul %23, %24, %cst_21 {dimension_numbers = #tpu.dot_dimension_numbers<[1], [0], [0], [1], [0, 0, 1, 1], [], []>} : vector<16x128xbf16>, vector<128x16xbf16>, vector<16x16xf32> -> vector<16x16xf32>
    %c0_22 = arith.constant 0 : index
    %c0_23 = arith.constant 0 : index
    %26 = vector.load %arg10[%c0_22, %c0_23] : memref<1x16xf32, #tpu.memory_space<vmem>>, vector<1x16xf32>
    %27 = vector.broadcast %26 : vector<1x16xf32> to vector<16x16xf32>
    %28 = arith.addf %25, %27 : vector<16x16xf32>
    %29 = math.exp %28 : vector<16x16xf32>
    %30 = arith.mulf %29, %1 : vector<16x16xf32>
    %31 = arith.addf %22, %30 : vector<16x16xf32>
    %32 = arith.mulf %1, %1 : vector<16x16xf32>
    %cst_24 = arith.constant -5.000000e-01 : f32
    %33 = vector.broadcast %cst_24 : f32 to vector<16x16xf32>
    %34 = arith.mulf %33, %32 : vector<16x16xf32>
    %35 = arith.subf %34, %28 : vector<16x16xf32>
    %cst_25 = arith.constant dense<0.000000e+00> : vector<16xf32>
    %36 = vector.multi_reduction <add>, %35, %cst_25 [1] : vector<16x16xf32> to vector<16xf32>
    %37 = vector.shape_cast %36 : vector<16xf32> to vector<16x1xf32>
    %38 = arith.mulf %31, %31 : vector<16x16xf32>
    %cst_26 = arith.constant -5.000000e-01 : f32
    %39 = vector.broadcast %cst_26 : f32 to vector<16x16xf32>
    %40 = arith.mulf %39, %38 : vector<16x16xf32>
    %cst_27 = arith.constant dense<0.000000e+00> : vector<16xf32>
    %41 = vector.multi_reduction <add>, %40, %cst_27 [1] : vector<16x16xf32> to vector<16xf32>
    %42 = vector.shape_cast %41 : vector<16xf32> to vector<16x1xf32>
    %43 = arith.truncf %31 : vector<16x16xf32> to vector<16x16xbf16>
    %c0_28 = arith.constant 0 : index
    %c0_29 = arith.constant 0 : index
    %44 = vector.load %arg11[%c0_28, %c0_29] : memref<16x128xbf16, #tpu.memory_space<vmem>>, vector<16x128xbf16>
    %cst_30 = arith.constant dense<0.000000e+00> : vector<16x128xf32>
    %45 = tpu.matmul %43, %44, %cst_30 {dimension_numbers = #tpu.dot_dimension_numbers<[1], [0], [0], [1], [0, 0, 1, 1], [], []>} : vector<16x16xbf16>, vector<16x128xbf16>, vector<16x128xf32> -> vector<16x128xf32>
    %c0_31 = arith.constant 0 : index
    %c0_32 = arith.constant 0 : index
    %46 = vector.load %arg12[%c0_31, %c0_32] : memref<1x128xf32, #tpu.memory_space<vmem>>, vector<1x128xf32>
    %47 = vector.broadcast %46 : vector<1x128xf32> to vector<16x128xf32>
    %48 = arith.addf %45, %47 : vector<16x128xf32>
    %cst_33 = arith.constant 0.000000e+00 : f32
    %49 = vector.broadcast %cst_33 : f32 to vector<16x128xf32>
    %50 = arith.maximumf %48, %49 : vector<16x128xf32>
    %51 = arith.truncf %50 : vector<16x128xf32> to vector<16x128xbf16>
    %c0_34 = arith.constant 0 : index
    %c0_35 = arith.constant 0 : index
    %52 = vector.load %arg13[%c0_34, %c0_35] : memref<128x128xbf16, #tpu.memory_space<vmem>>, vector<128x128xbf16>
    %cst_36 = arith.constant dense<0.000000e+00> : vector<16x128xf32>
    %53 = tpu.matmul %51, %52, %cst_36 {dimension_numbers = #tpu.dot_dimension_numbers<[1], [0], [0], [1], [0, 0, 1, 1], [], []>} : vector<16x128xbf16>, vector<128x128xbf16>, vector<16x128xf32> -> vector<16x128xf32>
    %c0_37 = arith.constant 0 : index
    %c0_38 = arith.constant 0 : index
    %54 = vector.load %arg14[%c0_37, %c0_38] : memref<1x128xf32, #tpu.memory_space<vmem>>, vector<1x128xf32>
    %55 = vector.broadcast %54 : vector<1x128xf32> to vector<16x128xf32>
    %56 = arith.addf %53, %55 : vector<16x128xf32>
    %cst_39 = arith.constant 0.000000e+00 : f32
    %57 = vector.broadcast %cst_39 : f32 to vector<16x128xf32>
    %58 = arith.maximumf %56, %57 : vector<16x128xf32>
    %59 = arith.truncf %58 : vector<16x128xf32> to vector<16x128xbf16>
    %c0_40 = arith.constant 0 : index
    %c0_41 = arith.constant 0 : index
    %60 = vector.load %arg15[%c0_40, %c0_41] : memref<128x256xbf16, #tpu.memory_space<vmem>>, vector<128x256xbf16>
    %cst_42 = arith.constant dense<0.000000e+00> : vector<16x256xf32>
    %61 = tpu.matmul %59, %60, %cst_42 {dimension_numbers = #tpu.dot_dimension_numbers<[1], [0], [0], [1], [0, 0, 1, 1], [], []>} : vector<16x128xbf16>, vector<128x256xbf16>, vector<16x256xf32> -> vector<16x256xf32>
    %c0_43 = arith.constant 0 : index
    %c0_44 = arith.constant 0 : index
    %62 = vector.load %arg16[%c0_43, %c0_44] : memref<1x256xf32, #tpu.memory_space<vmem>>, vector<1x256xf32>
    %63 = vector.broadcast %62 : vector<1x256xf32> to vector<16x256xf32>
    %64 = arith.addf %61, %63 : vector<16x256xf32>
    %65 = arith.extf %0 : vector<16x256xbf16> to vector<16x256xf32>
    %cst_45 = arith.constant 2.000000e+00 : f32
    %66 = vector.broadcast %cst_45 : f32 to vector<16x256xf32>
    %67 = arith.mulf %66, %65 : vector<16x256xf32>
    %cst_46 = arith.constant 1.000000e+00 : f32
    %68 = vector.broadcast %cst_46 : f32 to vector<16x256xf32>
    %69 = arith.subf %68, %67 : vector<16x256xf32>
    %70 = arith.mulf %69, %64 : vector<16x256xf32>
    %cst_47 = arith.constant 0.000000e+00 : f32
    %71 = vector.broadcast %cst_47 : f32 to vector<16x256xf32>
    %72 = arith.maximumf %70, %71 : vector<16x256xf32>
    %73 = math.absf %70 : vector<16x256xf32>
    %cst_48 = arith.constant 0.000000e+00 : f32
    %74 = vector.broadcast %cst_48 : f32 to vector<16x256xf32>
    %75 = arith.subf %74, %73 : vector<16x256xf32>
    %76 = math.exp %75 : vector<16x256xf32>
    %77 = math.log1p %76 : vector<16x256xf32>
    %78 = arith.addf %72, %77 : vector<16x256xf32>
    %cst_49 = arith.constant dense<0.000000e+00> : vector<16xf32>
    %79 = vector.multi_reduction <add>, %78, %cst_49 [1] : vector<16x256xf32> to vector<16xf32>
    %80 = vector.shape_cast %79 : vector<16xf32> to vector<16x1xf32>
    %cst_50 = arith.constant 0.000000e+00 : f32
    %81 = vector.broadcast %cst_50 : f32 to vector<16x1xf32>
    %82 = arith.subf %81, %80 : vector<16x1xf32>
    %83 = arith.subf %82, %37 : vector<16x1xf32>
    %84 = arith.addf %83, %42 : vector<16x1xf32>
    %cst_51 = arith.constant dense<0.000000e+00> : vector<1xf32>
    %85 = vector.multi_reduction <add>, %84, %cst_51 [0] : vector<16x1xf32> to vector<1xf32>
    %86 = vector.shape_cast %85 : vector<1xf32> to vector<1x1xf32>
    %87 = vector.shape_cast %86 : vector<1x1xf32> to vector<1x1xf32>
    %88 = vector.broadcast %87 : vector<1x1xf32> to vector<1x128xf32>
    %c0_52 = arith.constant 0 : index
    %c0_53 = arith.constant 0 : index
    %89 = vector.load %arg17[%c0_52, %c0_53] : memref<1x128xf32, #tpu.memory_space<vmem>>, vector<1x128xf32>
    tpu.vector_store %arg17[%c0_52, %c0_53], %88 {strides = array<i32>} : memref<1x128xf32, #tpu.memory_space<vmem>>, vector<1x128xf32>,
    return
  }
  func.func @transform_0(%arg0: i32) -> (i32, i32) {
    %c0_i32 = arith.constant 0 : i32
    %c0_i32_0 = arith.constant 0 : i32
    return %arg0, %c0_i32 : i32, i32
  }
  func.func @transform_1(%arg0: i32) -> (i32, i32) {
    %c0_i32 = arith.constant 0 : i32
    %c0_i32_0 = arith.constant 0 : i32
    return %arg0, %c0_i32 : i32, i32
  }
  func.func @transform_2(%arg0: i32) -> (i32, i32) {
    %c0_i32 = arith.constant 0 : i32
    %c0_i32_0 = arith.constant 0 : i32
    %c0_i32_1 = arith.constant 0 : i32
    return %c0_i32, %c0_i32_0 : i32, i32
  }
  func.func @transform_3(%arg0: i32) -> (i32, i32) {
    %c0_i32 = arith.constant 0 : i32
    %c0_i32_0 = arith.constant 0 : i32
    %c0_i32_1 = arith.constant 0 : i32
    return %c0_i32, %c0_i32_0 : i32, i32
  }
  func.func @transform_4(%arg0: i32) -> (i32, i32) {
    %c0_i32 = arith.constant 0 : i32
    %c0_i32_0 = arith.constant 0 : i32
    %c0_i32_1 = arith.constant 0 : i32
    return %c0_i32, %c0_i32_0 : i32, i32
  }
  func.func @transform_5(%arg0: i32) -> (i32, i32) {
    %c0_i32 = arith.constant 0 : i32
    %c0_i32_0 = arith.constant 0 : i32
    %c0_i32_1 = arith.constant 0 : i32
    return %c0_i32, %c0_i32_0 : i32, i32
  }
  func.func @transform_6(%arg0: i32) -> (i32, i32) {
    %c0_i32 = arith.constant 0 : i32
    %c0_i32_0 = arith.constant 0 : i32
    %c0_i32_1 = arith.constant 0 : i32
    return %c0_i32, %c0_i32_0 : i32, i32
  }
  func.func @transform_7(%arg0: i32) -> (i32, i32) {
    %c0_i32 = arith.constant 0 : i32
    %c0_i32_0 = arith.constant 0 : i32
    %c0_i32_1 = arith.constant 0 : i32
    return %c0_i32, %c0_i32_0 : i32, i32
  }
  func.func @transform_8(%arg0: i32) -> (i32, i32) {
    %c0_i32 = arith.constant 0 : i32
    %c0_i32_0 = arith.constant 0 : i32
    %c0_i32_1 = arith.constant 0 : i32
    return %c0_i32, %c0_i32_0 : i32, i32
  }
  func.func @transform_9(%arg0: i32) -> (i32, i32) {
    %c0_i32 = arith.constant 0 : i32
    %c0_i32_0 = arith.constant 0 : i32
    %c0_i32_1 = arith.constant 0 : i32
    return %c0_i32, %c0_i32_0 : i32, i32
  }
  func.func @transform_10(%arg0: i32) -> (i32, i32) {
    %c0_i32 = arith.constant 0 : i32
    %c0_i32_0 = arith.constant 0 : i32
    %c0_i32_1 = arith.constant 0 : i32
    return %c0_i32, %c0_i32_0 : i32, i32
  }
  func.func @transform_11(%arg0: i32) -> (i32, i32) {
    %c0_i32 = arith.constant 0 : i32
    %c0_i32_0 = arith.constant 0 : i32
    %c0_i32_1 = arith.constant 0 : i32
    return %c0_i32, %c0_i32_0 : i32, i32
  }
  func.func @transform_12(%arg0: i32) -> (i32, i32) {
    %c0_i32 = arith.constant 0 : i32
    %c0_i32_0 = arith.constant 0 : i32
    %c0_i32_1 = arith.constant 0 : i32
    return %c0_i32, %c0_i32_0 : i32, i32
  }
  func.func @transform_13(%arg0: i32) -> (i32, i32) {
    %c0_i32 = arith.constant 0 : i32
    %c0_i32_0 = arith.constant 0 : i32
    %c0_i32_1 = arith.constant 0 : i32
    return %c0_i32, %c0_i32_0 : i32, i32
  }
  func.func @transform_14(%arg0: i32) -> (i32, i32) {
    %c0_i32 = arith.constant 0 : i32
    %c0_i32_0 = arith.constant 0 : i32
    %c0_i32_1 = arith.constant 0 : i32
    return %c0_i32, %c0_i32_0 : i32, i32
  }
  func.func @transform_15(%arg0: i32) -> (i32, i32) {
    %c0_i32 = arith.constant 0 : i32
    %c0_i32_0 = arith.constant 0 : i32
    %c0_i32_1 = arith.constant 0 : i32
    return %c0_i32, %c0_i32_0 : i32, i32
  }
  func.func @transform_16(%arg0: i32) -> (i32, i32) {
    %c0_i32 = arith.constant 0 : i32
    %c0_i32_0 = arith.constant 0 : i32
    return %arg0, %c0_i32 : i32, i32
  }
}

</mosaic_0001>

<bundles_post_ra>
// kernel: tpu_custom_call.1
= control target key start
LH: loop header
LB: loop body
LE: loop exit
PB: predicated region body
PF: predicated region fallthrough
CT: control target
= control target key end

     0   :  { %s2077_s0 = inlined_call_operand.vmem [shape: bf16[16,256], index: 0, kind: input, shape index: {}]   ;;  %s2078_s1 = inlined_call_operand.hbm [shape: f32[16,16], index: 1, kind: input, shape index: {}]   ;;  %s2079_s2 = inlined_call_operand.vmem [shape: bf16[256,128], index: 2, kind: input, shape index: {}]   ;;  %s2080_s3 = inlined_call_operand.hbm [shape: f32[1,128], index: 3, kind: input, shape index: {}]   ;;  %s2081_s4 = inlined_call_operand.hbm [shape: bf16[128,128], index: 4, kind: input, shape index: {}]   ;;  %s2082_s5 = inlined_call_operand.hbm [shape: f32[1,128], index: 5, kind: input, shape index: {}]   ;;  %s2083_s6 = inlined_call_operand.vmem [shape: bf16[128,16], index: 6, kind: input, shape index: {}]   ;;  %s2084_s7 = inlined_call_operand.hbm [shape: f32[1,16], index: 7, kind: input, shape index: {}]   ;;  %s2085_s8 = inlined_call_operand.vmem [shape: bf16[128,16], index: 8, kind: input, shape index: {}]   ;;  %s2086_s9 = inlined_call_operand.vmem [shape: f32[1,16], index: 9, kind: input, shape index: {}]   ;;  %s2087_s10 = inlined_call_operand.vmem [shape: bf16[16,128], index: 10, kind: input, shape index: {}]   ;;  %s2088_s11 = inlined_call_operand.vmem [shape: f32[1,128], index: 11, kind: input, shape index: {}]   ;;  %s2089_s12 = inlined_call_operand.hbm [shape: bf16[128,128], index: 12, kind: input, shape index: {}]   ;;  %s2090_s13 = inlined_call_operand.vmem [shape: f32[1,128], index: 13, kind: input, shape index: {}]   ;;  %s2091_s14 = inlined_call_operand.hbm [shape: bf16[128,256], index: 14, kind: input, shape index: {}]   ;;  %s2092_s15 = inlined_call_operand.vmem [shape: f32[1,256], index: 15, kind: input, shape index: {}]   ;;  %s2093_s16 = inlined_call_operand.hbm [shape: f32[1,128], index: 16, kind: output, shape index: {}]  }
   0x1   :  { %2095 = sst [smem:[#allocation20_spill]] %s2077_s0 }
   0x2   :  { %21 = vsyncpa [#allocation3], 0 }
   0x3   :  { %22 = vsyncpa [#allocation6], 0 }
   0x4   :  { %23 = vsyncpa [#allocation9], 0 }
   0x5   :  { %24 = vsyncpa [#allocation12], 0 }
   0x6   :  { %25 = vsyncpa [#allocation4], 0  ;;  %s1666_s21 = smov [#allocation5]   ;;  %s1667_s23 = smov [#allocation8]  }
   0x7   :  { %s48_s22 = sshll.u32 %s1666_s21, 4  ;;  %s70_s24 = sshll.u32 %s1667_s23, 4  ;;  %s49_s22 = int_to_ptr.vmem [resolvable:$true] %s48_s22  ;;  %s71_s24 = int_to_ptr.vmem [resolvable:$true] %s70_s24 }
   0x8   :  { %s1480_s27 = scalar_lea.hbm %s2080_s3, 16 }
   0x9   :  { %p1481_p0 = scmp.ne.s32.totalorder %s2080_s3, %s1480_s27  ;;  %p1484_p1 = scmp.lt.u32.totalorder %s1480_s27, %s2080_s3 }
   0xb   :  { %p1486_p2 = pnand %p1484_p1, %p1481_p0 }
   0xd   :  { %1489 = shalt.err (!%p1486_p2)
}
   0xe   :  { %s1490_s17 = scalar_lea.vmem %s49_s22, 16  ;;  %s1494_s18 = scalar_lea.vmem %s49_s22, 32 }
   0xf   :  { %p1491_p3 = scmp.ne.s32.totalorder %s49_s22, %s1490_s17  ;;  %p1495_p4 = scmp.lt.s32.totalorder %s49_s22, %s49_s22 }
  0x10   :  { %p1496_p5 = scmp.lt.s32.totalorder %s1494_s18, %s1490_s17 }
  0x12   :  { %p1497_p6 = por %p1496_p5, %p1495_p4 }
  0x14   :  { %p1498_p7 = pnand %p1497_p6, %p1491_p3 }
  0x16   :  { %1501 = shalt.err (!%p1498_p7)
}
  0x17   :  { %51 = dma.hbm_to_vmem [thread:$0]  %s2080_s3, 16, %s49_s22, [#allocation6]  }
  0x18   :  { %s1502_s25 = scalar_lea.hbm %s2082_s5, 16 }
  0x19   :  { %p1503_p8 = scmp.ne.s32.totalorder %s2082_s5, %s1502_s25  ;;  %p1506_p9 = scmp.lt.u32.totalorder %s1502_s25, %s2082_s5 }
  0x1b   :  { %p1508_p10 = pnand %p1506_p9, %p1503_p8 }
  0x1d   :  { %1511 = shalt.err (!%p1508_p10)
}
  0x1e   :  { %s1512_s30 = scalar_lea.vmem %s71_s24, 16  ;;  %s1516_s0 = scalar_lea.vmem %s71_s24, 32 }
  0x1f   :  { %p1513_p11 = scmp.ne.s32.totalorder %s71_s24, %s1512_s30  ;;  %p1517_p12 = scmp.lt.s32.totalorder %s71_s24, %s71_s24 }
  0x20   :  { %p1518_p13 = scmp.lt.s32.totalorder %s1516_s0, %s1512_s30 }
  0x22   :  { %p1519_p0 = por %p1518_p13, %p1517_p12 }
  0x24   :  { %p1520_p1 = pnand %p1519_p0, %p1513_p11 }
  0x26   :  { %1523 = shalt.err (!%p1520_p1)
}
  0x27   :  { %73 = dma.hbm_to_vmem [thread:$0]  %s2082_s5, 16, %s71_s24, [#allocation9]  }
  0x28   :  { %s1668_s17 = smov [#allocation11]   ;;  %s1669_s19 = smov [#allocation2]  }
  0x29   :  { %s99_s18 = sshll.u32 %s1668_s17, 4  ;;  %s33_s20 = sshll.u32 %s1669_s19, 4  ;;  %s100_s18 = int_to_ptr.vmem [resolvable:$true] %s99_s18  ;;  %s1790_s20 = int_to_ptr.vmem [resolvable:$true] %s33_s20 }
  0x2a   :  { %s1524_s25 = scalar_lea.hbm %s2089_s12, 1024 }
  0x2b   :  { %p1525_p2 = scmp.ne.s32.totalorder %s2089_s12, %s1524_s25  ;;  %p1528_p3 = scmp.lt.u32.totalorder %s1524_s25, %s2089_s12 }
  0x2d   :  { %p1530_p4 = pnand %p1528_p3, %p1525_p2 }
  0x2f   :  { %1533 = shalt.err (!%p1530_p4)
}
  0x30   :  { %s1534_s5 = scalar_lea.vmem %s100_s18, 1024  ;;  %p1539_p6 = scmp.lt.s32.totalorder %s100_s18, %s100_s18 }
  0x31   :  { %p1535_p5 = scmp.ne.s32.totalorder %s100_s18, %s1534_s5  ;;  %p1540_p7 = scmp.lt.s32.totalorder %s1534_s5, %s1534_s5 }
  0x33   :  { %p1541_p8 = por %p1540_p7, %p1539_p6 }
  0x35   :  { %p1542_p9 = pnand %p1541_p8, %p1535_p5 }
  0x37   :  { %1545 = shalt.err (!%p1542_p9)
}
  0x38   :  { %s1670_s24 = smov 64   ;;  %s1671_s30 = smov 4  }
  0x39   :  { %105 = dma.hbm_to_vmem [thread:$0]  %s2089_s12, 1024, %s100_s18, [#allocation12], %s1670_s24, %s1670_s24, %s1671_s30  }
  0x3a   :  { %s1546_s19 = scalar_lea.hbm %s2078_s1, 256 }
  0x3b   :  { %p1547_p10 = scmp.ne.s32.totalorder %s2078_s1, %s1546_s19  ;;  %p1550_p11 = scmp.lt.u32.totalorder %s1546_s19, %s2078_s1 }
  0x3d   :  { %p1552_p12 = pnand %p1550_p11, %p1547_p10 }
  0x3f   :  { %1555 = shalt.err (!%p1552_p12)
}
  0x40   :  { %s1556_s27 = scalar_lea.vmem %s1790_s20, 256  ;;  %p1561_p0 = scmp.lt.s32.totalorder %s1790_s20, %s1790_s20 }
  0x41   :  { %p1557_p13 = scmp.ne.s32.totalorder %s1790_s20, %s1556_s27  ;;  %p1562_p1 = scmp.lt.s32.totalorder %s1556_s27, %s1556_s27 }
  0x43   :  { %p1563_p2 = por %p1562_p1, %p1561_p0 }
  0x45   :  { %p1564_p3 = pnand %p1563_p2, %p1557_p13 }
  0x47   :  { %1567 = shalt.err (!%p1564_p3)
}
  0x48   :  { %s1672_s12 = smov 128   ;;  %s1673_s18 = smov 8  }
  0x49   :  { %39 = dma.hbm_to_vmem [thread:$0]  %s2078_s1, 256, %s1790_s20, [#allocation3], %s1672_s12, %s1672_s12, %s1673_s18  }
  0x4a   :  { %s1674_s5 = smov [#allocation7]   ;;  %s1675_s3 = smov [#allocation10]  }
  0x4b   :  { %s57_s0 = sshll.u32 %s1674_s5, 4  ;;  %s82_s22 = sshll.u32 %s1675_s3, 4  ;;  %s58_s0 = int_to_ptr.vmem [resolvable:$true] %s57_s0  ;;  %s83_s22 = int_to_ptr.vmem [resolvable:$true] %s82_s22 }
  0x4c   :  { %s1568_s21 = scalar_lea.hbm %s2081_s4, 1024 }
  0x4d   :  { %p1569_p4 = scmp.ne.s32.totalorder %s2081_s4, %s1568_s21  ;;  %p1572_p5 = scmp.lt.u32.totalorder %s1568_s21, %s2081_s4 }
  0x4f   :  { %p1574_p6 = pnand %p1572_p5, %p1569_p4 }
  0x51   :  { %1577 = shalt.err (!%p1574_p6)
}
  0x52   :  { %s1578_s1 = scalar_lea.vmem %s58_s0, 1024  ;;  %p1583_p8 = scmp.lt.s32.totalorder %s58_s0, %s58_s0 }
  0x53   :  { %p1579_p7 = scmp.ne.s32.totalorder %s58_s0, %s1578_s1  ;;  %p1584_p9 = scmp.lt.s32.totalorder %s1578_s1, %s1578_s1 }
  0x55   :  { %p1585_p10 = por %p1584_p9, %p1583_p8 }
  0x57   :  { %p1586_p11 = pnand %p1585_p10, %p1579_p7 }
  0x59   :  { %1589 = shalt.err (!%p1586_p11)
}
  0x5a   :  { %63 = dma.hbm_to_vmem [thread:$0]  %s2081_s4, 1024, %s58_s0, [#allocation6], %s1670_s24, %s1670_s24, %s1671_s30  }
  0x5b   :  { %s1590_s3 = scalar_lea.hbm %s2084_s7, 16 }
  0x5c   :  { %p1591_p12 = scmp.ne.s32.totalorder %s2084_s7, %s1590_s3  ;;  %p1594_p13 = scmp.lt.u32.totalorder %s1590_s3, %s2084_s7 }
  0x5e   :  { %p1596_p0 = pnand %p1594_p13, %p1591_p12 }
  0x60   :  { %1599 = shalt.err (!%p1596_p0)
}
  0x61   :  { %s1600_s25 = scalar_lea.vmem %s83_s22, 16  ;;  %s1604_s26 = scalar_lea.vmem %s83_s22, 32 }
  0x62   :  { %p1601_p1 = scmp.ne.s32.totalorder %s83_s22, %s1600_s25  ;;  %p1605_p2 = scmp.lt.s32.totalorder %s83_s22, %s83_s22 }
  0x63   :  { %p1606_p3 = scmp.lt.s32.totalorder %s1604_s26, %s1600_s25 }
  0x65   :  { %p1607_p4 = por %p1606_p3, %p1605_p2 }
  0x67   :  { %p1608_p5 = pnand %p1607_p4, %p1601_p1 }
  0x69   :  { %1611 = shalt.err (!%p1608_p5)
}
  0x6a   :  { %85 = dma.hbm_to_vmem [thread:$0]  %s2084_s7, 16, %s83_s22, [#allocation9]  }
  0x6b   :  { %s1676_s30 = smov [#allocation13]   ;;  %s1612_s20 = scalar_lea.hbm %s2091_s14, 2048 }
  0x6c   :  { %s113_s0 = sshll.u32 %s1676_s30, 4  ;;  %p1613_p6 = scmp.ne.s32.totalorder %s2091_s14, %s1612_s20  ;;  %s114_s0 = int_to_ptr.vmem [resolvable:$true] %s113_s0 }
  0x6d   :  { %p1616_p7 = scmp.lt.u32.totalorder %s1612_s20, %s2091_s14 }
  0x6f   :  { %p1618_p8 = pnand %p1616_p7, %p1613_p6 }
  0x71   :  { %1621 = shalt.err (!%p1618_p8)
}
  0x72   :  { %s1622_s17 = scalar_lea.vmem %s114_s0, 2048  ;;  %p1627_p10 = scmp.lt.s32.totalorder %s114_s0, %s114_s0 }
  0x73   :  { %p1623_p9 = scmp.ne.s32.totalorder %s114_s0, %s1622_s17  ;;  %p1628_p11 = scmp.lt.s32.totalorder %s1622_s17, %s1622_s17 }
  0x75   :  { %p1629_p12 = por %p1628_p11, %p1627_p10 }
  0x77   :  { %p1630_p13 = pnand %p1629_p12, %p1623_p9 }
  0x79   :  { %1633 = shalt.err (!%p1630_p13)
}
  0x7a   :  { %119 = dma.hbm_to_vmem [thread:$0]  %s2091_s14, 2048, %s114_s0, [#allocation12], %s1672_s12, %s1672_s12, %s1673_s18  }
  0x7b   :  { %1656 = dma.done.wait [#allocation3], 256  }
  0x7c   :  { %1657 = vsyncadd [#allocation3], 4294967040 }
  0x7d   :  { %1658 = dma.done.wait [#allocation6], 1040  }
  0x7e   :  { %1659 = vsyncadd [#allocation6], 4294966256 }
  0x7f   :  { %1660 = dma.done.wait [#allocation9], 32  }
  0x80   :  { %1661 = vsyncadd [#allocation9], 4294967264 }
  0x81   :  { %1662 = dma.done.wait [#allocation12], 3072  }
  0x82   :  { %1663 = vsyncadd [#allocation12], 4294964224  ;;  %v1677_v0 = vmov 0.0   ;;  %v1385_v1 = vld [vmem:[%s2079_s2 + $0x40] sm:$0xff]   ;;  %v1387_v3 = vld [vmem:[%s2079_s2 + $0x48] sm:$0xff]   ;;  %s2096_s23 = sld [smem:[#allocation20_spill]] }
  0x83   :  { %1284 = vmatprep.subr.bf16.mxu1 %v1677_v0  ;;  %v1386_v2 = vld [vmem:[%s2079_s2] sm:$0xff]   ;;  %1224 = vmatprep.subr.bf16.mxu0 %v1385_v1  ;;  %v1388_v4 = vld [vmem:[%s2079_s2 + $0x8] sm:$0xff]   ;;  %v1389_v5 = vld [vmem:[%s2079_s2 + $0x50] sm:$0xff]   ;;  %vm1678_vm0 = vmmov 0   ;;  %vm690_vm1 = vcmask 130048  }
  0x84   :  { %1225 = vmatpush3.bf16.msra.mxu0 %v1386_v2  ;;  %v1390_v6 = vld [vmem:[%s2079_s2 + $0x10] sm:$0xff]   ;;  %v1391_v7 = vld [vmem:[%s2079_s2 + $0x58] sm:$0xff]   ;;  %v1393_v9 = vld [vmem:[%s2079_s2 + $0x60] sm:$0xff]   ;;  %1300 = vmatprep.mubr.msk.bf16.mxu1 %vm1678_vm0, %v1677_v0 }
  0x85   :  { %1226 = vmatprep.subr.bf16.mxu0 %v1387_v3  ;;  %v1392_v8 = vld [vmem:[%s2079_s2 + $0x18] sm:$0xff]   ;;  %v1394_v10 = vld [vmem:[%s2079_s2 + $0x20] sm:$0xff]   ;;  %v1395_v11 = vld [vmem:[%s2079_s2 + $0x68] sm:$0xff]  }
  0x86   :  { %v1403_v15 = vld [vmem:[#allocation7] sm:$0xff]   ;;  %v1396_v16 = vld [vmem:[%s2079_s2 + $0x28] sm:$0xff]   ;;  %v1404_v18 = vld [vmem:[#allocation7 + $0x8] sm:$0xff]  }
  0x87   :  { %v1397_v17 = vld [vmem:[%s2079_s2 + $0x70] sm:$0xff]   ;;  %1285 = vmatpush3.bf16.msra.mxu1 %v1403_v15  ;;  %v1399_v20 = vld [vmem:[%s2079_s2 + $0x78] sm:$0xff]   ;;  %v1405_v21 = vld [vmem:[#allocation7 + $0x10] sm:$0xff]  }
  0x88   :  { %1227 = vmatpush3.bf16.msra.mxu0 %v1388_v4  ;;  %v1906_v12 = vld [vmem:[%s2096_s23] sm:$0xff]  ;;  %v1911_v13 = vld [vmem:[%s2096_s23 + $0x8] sm:$0xff]  ;;  %v1398_v19 = vld [vmem:[%s2079_s2 + $0x30] sm:$0xff]   ;;  %1286 = vmatprep.subr.bf16.mxu1 %v1677_v0 }
  0x89   :  { %1228 = vmatprep.subr.bf16.mxu0 %v1389_v5  ;;  %v1152_v14 = vcombine.high %v1906_v12, %v1911_v13  ;;  %v1400_v22 = vld [vmem:[%s2079_s2 + $0x38] sm:$0xff]   ;;  %v1406_v23 = vld [vmem:[#allocation7 + $0x18] sm:$0xff]   ;;  %v1151_v24 = vcombine.low %v1906_v12, %v1911_v13  ;;  %v1409_v27 = vld [vmem:[#allocation7 + $0x30] sm:$0xff]  }
  0x8a   :  { %v1407_v25 = vld [vmem:[#allocation7 + $0x20] sm:$0xff]   ;;  %v1408_v26 = vld [vmem:[#allocation7 + $0x28] sm:$0xff]   ;;  %v1410_v28 = vld [vmem:[#allocation7 + $0x38] sm:$0xff]  }
  0x8b   :  { %325 = vmatprep.mubr.bf16.mxu0 %v1152_v14  ;;  %1287 = vmatpush3.bf16.msra.mxu1 %v1404_v18  ;;  %v1411_v29 = vld [vmem:[%s2083_s6] sm:$0xff]   ;;  %v1413_v30 = vld [vmem:[%s2083_s6 + $0x8] sm:$0xff]   ;;  %v1415_v31 = vld [vmem:[%s2083_s6 + $0x10] sm:$0xff]  }
  0x8c   :  { %1229 = vmatpush3.bf16.msra.mxu0 %v1390_v6  ;;  %1288 = vmatprep.subr.bf16.mxu1 %v1677_v0  ;;  %v1417_v32 = vld [vmem:[%s2083_s6 + $0x18] sm:$0xff]   ;;  %v1419_v33 = vld [vmem:[%s2083_s6 + $0x20] sm:$0xff]   ;;  %v1421_v34 = vld [vmem:[%s2083_s6 + $0x28] sm:$0xff]  }
  0x8d   :  { %1230 = vmatprep.subr.bf16.mxu0 %v1391_v7  ;;  %v1150_v36 = vld [vmem:[#allocation5] ss:$0 sm:$0xff]  ;;  %v1412_v46 = vld [vmem:[%s2085_s8] sm:$0xff]   ;;  %v1414_v48 = vld [vmem:[%s2085_s8 + $0x8] sm:$0xff]  }
  0x8e   :  { %v1416_v49 = vld [vmem:[%s2085_s8 + $0x10] sm:$0xff]   ;;  %v1418_v50 = vld [vmem:[%s2085_s8 + $0x18] sm:$0xff]   ;;  %v1420_v51 = vld [vmem:[%s2085_s8 + $0x20] sm:$0xff]  }
  0x8f   :  { %1289 = vmatpush3.bf16.msra.mxu1 %v1405_v21  ;;  %v1422_v52 = vld [vmem:[%s2085_s8 + $0x28] sm:$0xff]   ;;  %v1423_v53 = vld [vmem:[%s2083_s6 + $0x30] sm:$0xff]   ;;  %v1425_v55 = vld [vmem:[%s2083_s6 + $0x38] sm:$0xff]  }
  0x90   :  { %1231 = vmatpush3.bf16.msra.mxu0 %v1392_v8  ;;  %1290 = vmatprep.subr.bf16.mxu1 %v1677_v0  ;;  %v1424_v54 = vld [vmem:[%s2085_s8 + $0x30] sm:$0xff]   ;;  %v1426_v56 = vld [vmem:[%s2085_s8 + $0x38] sm:$0xff]   ;;  %v1427_v4 = vld [vmem:[%s2087_s10] sm:$0xff]  }
  0x91   :  { %1232 = vmatprep.subr.bf16.mxu0 %v1393_v9  ;;  %v1169_v57 = vld [vmem:[#allocation8] ss:$0 sm:$0xff]  ;;  %v146_v5 = vld [vmem:[#allocation2] sm:$0xff]  ;;  %v147_v6 = vld [vmem:[#allocation2 + $0x8] sm:$0xff] }
  0x92   :  { %v684_v7 = vmul.f32 %v146_v5, %v146_v5  ;;  %v685_v8 = vmul.f32 %v147_v6, %v147_v6  ;;  %v1187_v9 = vld [vmem:[%s2086_s9] ss:$0 sm:$0xff] }
  0x93   :  { %1291 = vmatpush3.bf16.msra.mxu1 %v1406_v23 }
  0x94   :  { %1233 = vmatpush3.bf16.msra.mxu0 %v1394_v10  ;;  %1292 = vmatprep.subr.bf16.mxu1 %v1677_v0  ;;  %v686_v10 = vmul.f32 -0.5, %v684_v7  ;;  %v687_v18 = vmul.f32 -0.5, %v685_v8 }
  0x95   :  { %1234 = vmatprep.subr.bf16.mxu0 %v1395_v11 }
  0x97   :  { %1293 = vmatpush3.bf16.msra.mxu1 %v1407_v25 }
  0x98   :  { %1235 = vmatpush3.bf16.msra.mxu0 %v1396_v16  ;;  %1294 = vmatprep.subr.bf16.mxu1 %v1677_v0 }
  0x99   :  { %1236 = vmatprep.subr.bf16.mxu0 %v1397_v17 }
  0x9b   :  { %1295 = vmatpush3.bf16.msra.mxu1 %v1408_v26 }
  0x9c   :  { %1237 = vmatpush3.bf16.msra.mxu0 %v1398_v19  ;;  %1296 = vmatprep.subr.bf16.mxu1 %v1677_v0 }
  0x9d   :  { %1238 = vmatprep.subr.bf16.mxu0 %v1399_v20 }
  0x9f   :  { %1297 = vmatpush3.bf16.msra.mxu1 %v1409_v27 }
  0xa0   :  { %1239 = vmatpush3.bf16.msra.mxu0 %v1400_v22  ;;  %1298 = vmatprep.subr.bf16.mxu1 %v1677_v0 }
  0xa1   :  { %1304 = vmatprep.subr.bf16.mxu0 %v1677_v0 }
  0xa3   :  { %326 = vmatmul.mubr.bf16.vlgmr.msra.gmra.mrb[0].mxu0 %v1151_v24  ;;  %1299 = vmatpush3.bf16.msra.mxu1 %v1410_v28 }
  0xa4   :  { %1324 = vmatprep.subr.bf16.mxu1 %v1677_v0  ;;  %1320 = vmatprep.mubr.msk.bf16.mxu0 %vm1678_vm0, %v1677_v0 }
  0xa5   :  { %1305 = vmatpush3.bf16.msra.mxu0 %v1411_v29 }
  0xa6   :  { %1306 = vmatprep.subr.bf16.mxu0 %v1677_v0 }
  0xa9   :  { %1307 = vmatpush3.bf16.msra.mxu0 %v1413_v30  ;;  %v1178_v30 = vld [vmem:[#allocation10] ss:$0 sm:$0xff] }
  0xaa   :  { %1308 = vmatprep.subr.bf16.mxu0 %v1677_v0 }
  0xad   :  { %1309 = vmatpush3.bf16.msra.mxu0 %v1415_v31 }
  0xae   :  { %1310 = vmatprep.subr.bf16.mxu0 %v1677_v0 }
  0xb1   :  { %1311 = vmatpush3.bf16.msra.mxu0 %v1417_v32 }
  0xb2   :  { %1312 = vmatprep.subr.bf16.mxu0 %v1677_v0 }
  0xb5   :  { %1313 = vmatpush3.bf16.msra.mxu0 %v1419_v33 }
  0xb6   :  { %1314 = vmatprep.subr.bf16.mxu0 %v1677_v0 }
  0xb9   :  { %1315 = vmatpush3.bf16.msra.mxu0 %v1421_v34 }
  0xba   :  { %1316 = vmatprep.subr.bf16.mxu0 %v1677_v0 }
  0xbd   :  { %1317 = vmatpush3.bf16.msra.mxu0 %v1423_v53  ;;  %v1435_v53 = vld [vmem:[#allocation11 + $0x38] sm:$0xff]  }
  0xbe   :  { %1318 = vmatprep.subr.bf16.mxu0 %v1677_v0 }
  0xc1   :  { %1319 = vmatpush3.bf16.msra.mxu0 %v1425_v55  ;;  %v1438_v55 = vld [vmem:[#allocation13 + $0x4] ss:$8 sps:$4 sm:$0xff]  }
  0xc2   :  { %1344 = vmatprep.subr.bf16.mxu0 %v1677_v0 }
 0x176   :  { %v1240_v35 = vpop.f32.mrb[0].mxu0 }
 0x177   :  { %v1241_v37 = vpop.f32.mrb[1].mxu0 }
 0x178   :  { %v1242_v38 = vadd.f32 %v1241_v37, %v1240_v35  ;;  %v1243_v39 = vpop.f32.mrb[2].mxu0 }
 0x179   :  { %v1244_v40 = vpop.f32.mrb[3].mxu0 }
 0x17a   :  { %v328_v41 = vadd.f32 %v1242_v38, %v1150_v36  ;;  %v1245_v42 = vadd.f32 %v1244_v40, %v1243_v39 }
 0x17c   :  { %v331_v43 = vadd.f32 %v1245_v42, %v1150_v36  ;;  %v334_v44 = vmax.f32 %v328_v41, 0.0 }
 0x17e   :  { %v335_v45 = vmax.f32 %v331_v43, 0.0 }
 0x180   :  { %v336_v47 = vpack.c.bf16 %v335_v45, %v334_v44 }
 0x182   :  { %1301 = vmatmul.mubr.bf16.vlgmr.msra.gmra.mrb[0].mxu1 %v336_v47  ;;  %v1429_v47 = vld [vmem:[#allocation11 + $0x8] sm:$0xff]  }
 0x183   :  { %1325 = vmatpush3.bf16.msra.mxu1 %v1412_v46  ;;  %1340 = vmatprep.mubr.msk.bf16.mxu1 %vm1678_vm0, %v1677_v0  ;;  %v1428_v46 = vld [vmem:[#allocation11] sm:$0xff]  }
 0x184   :  { %1326 = vmatprep.subr.bf16.mxu1 %v1677_v0 }
 0x187   :  { %1327 = vmatpush3.bf16.msra.mxu1 %v1414_v48  ;;  %v1430_v48 = vld [vmem:[#allocation11 + $0x10] sm:$0xff]  }
 0x188   :  { %1328 = vmatprep.subr.bf16.mxu1 %v1677_v0 }
 0x18b   :  { %1329 = vmatpush3.bf16.msra.mxu1 %v1416_v49  ;;  %v1431_v49 = vld [vmem:[#allocation11 + $0x18] sm:$0xff]  }
 0x18c   :  { %1330 = vmatprep.subr.bf16.mxu1 %v1677_v0 }
 0x18f   :  { %1331 = vmatpush3.bf16.msra.mxu1 %v1418_v50  ;;  %v1432_v50 = vld [vmem:[#allocation11 + $0x20] sm:$0xff]  }
 0x190   :  { %1332 = vmatprep.subr.bf16.mxu1 %v1677_v0 }
 0x193   :  { %1333 = vmatpush3.bf16.msra.mxu1 %v1420_v51  ;;  %v1433_v51 = vld [vmem:[#allocation11 + $0x28] sm:$0xff]  }
 0x194   :  { %1334 = vmatprep.subr.bf16.mxu1 %v1677_v0 }
 0x197   :  { %1335 = vmatpush3.bf16.msra.mxu1 %v1422_v52  ;;  %v1434_v52 = vld [vmem:[#allocation11 + $0x30] sm:$0xff]  }
 0x198   :  { %1336 = vmatprep.subr.bf16.mxu1 %v1677_v0 }
 0x19b   :  { %1337 = vmatpush3.bf16.msra.mxu1 %v1424_v54  ;;  %v1436_v54 = vld [vmem:[#allocation13] ss:$8 sps:$4 sm:$0xff]  }
 0x19c   :  { %1338 = vmatprep.subr.bf16.mxu1 %v1677_v0 }
 0x19f   :  { %1339 = vmatpush3.bf16.msra.mxu1 %v1426_v56  ;;  %v1441_v56 = vld [vmem:[#allocation13 + $0x14] ss:$8 sps:$4 sm:$0xff]  }
 0x1a0   :  { %1350 = vmatprep.subr.bf16.mxu1 %v1677_v0 }
 0x255   :  { %v442_v58 = vpop.f32.mrb[0].mxu1 }
 0x256   :  { %v443_v59 = vadd.f32 %v1169_v57, %v442_v58  ;;  %v1302_v60 = vpop.f32.mrb[1].mxu1  ;;  %v1444_v58 = vld [vmem:[#allocation13 + $0x24] ss:$8 sps:$4 sm:$0xff]  }
 0x257   :  { %v445_v61 = vpop.f32.mrb[2].mxu1  ;;  %v1447_v60 = vld [vmem:[#allocation13 + $0x34] ss:$8 sps:$4 sm:$0xff]  }
 0x258   :  { %v446_v62 = vadd.f32 %v1169_v57, %v445_v61  ;;  %v1303_v63 = vpop.f32.mrb[3].mxu1  ;;  %v449_v1 = vmax.f32 %v443_v59, 0.0  ;;  %v1439_v57 = vld [vmem:[#allocation13 + $0x10] ss:$8 sps:$4 sm:$0xff]   ;;  %v1442_v59 = vld [vmem:[#allocation13 + $0x20] ss:$8 sps:$4 sm:$0xff]  }
 0x259   :  { %v1445_v61 = vld [vmem:[#allocation13 + $0x30] ss:$8 sps:$4 sm:$0xff]   ;;  %v1453_v63 = vld [vmem:[#allocation13 + $0x54] ss:$8 sps:$4 sm:$0xff]  }
 0x25a   :  { %v450_v2 = vmax.f32 %v446_v62, 0.0  ;;  %v1450_v62 = vld [vmem:[#allocation13 + $0x44] ss:$8 sps:$4 sm:$0xff]  }
 0x25c   :  { %v451_v3 = vpack.c.bf16 %v450_v2, %v449_v1  ;;  %v1451_v1 = vld [vmem:[#allocation13 + $0x50] ss:$8 sps:$4 sm:$0xff]   ;;  %v1196_v2 = vld [vmem:[%s2088_s11] ss:$0 sm:$0xff] }
 0x25e   :  { %1321 = vmatmul.mubr.bf16.vlgmr.msra.gmra.mrb[4].mxu0 %v451_v3  ;;  %1341 = vmatmul.mubr.bf16.vlgmr.msra.gmra.mrb[4].mxu1 %v451_v3 }
 0x25f   :  { %1346 = vmatprep.mubr.msk.bf16.mxu0 %vm1678_vm0, %v1677_v0  ;;  %1366 = vmatprep.mubr.msk.bf16.mxu1 %vm1678_vm0, %v1677_v0 }
 0x260   :  { %1345 = vmatpush3.bf16.msra.mxu0 %v1427_v4  ;;  %1351 = vmatpush3.bf16.msra.mxu1 %v1428_v46 }
 0x261   :  { %1352 = vmatprep.subr.bf16.mxu1 %v1677_v0  ;;  %993 = vmatprep.subr.bf16.mxu0 %v1438_v55 }
 0x264   :  { %1353 = vmatpush3.bf16.msra.mxu1 %v1429_v47 }
 0x265   :  { %1354 = vmatprep.subr.bf16.mxu1 %v1677_v0 }
 0x268   :  { %1355 = vmatpush3.bf16.msra.mxu1 %v1430_v48 }
 0x269   :  { %1356 = vmatprep.subr.bf16.mxu1 %v1677_v0 }
 0x26c   :  { %1357 = vmatpush3.bf16.msra.mxu1 %v1431_v49 }
 0x26d   :  { %1358 = vmatprep.subr.bf16.mxu1 %v1677_v0 }
 0x270   :  { %1359 = vmatpush3.bf16.msra.mxu1 %v1432_v50 }
 0x271   :  { %1360 = vmatprep.subr.bf16.mxu1 %v1677_v0 }
 0x274   :  { %1361 = vmatpush3.bf16.msra.mxu1 %v1433_v51 }
 0x275   :  { %1362 = vmatprep.subr.bf16.mxu1 %v1677_v0 }
 0x278   :  { %1363 = vmatpush3.bf16.msra.mxu1 %v1434_v52 }
 0x279   :  { %1364 = vmatprep.subr.bf16.mxu1 %v1677_v0  ;;  %v1448_v0 = vld [vmem:[#allocation13 + $0x40] ss:$8 sps:$4 sm:$0xff]  }
 0x27c   :  { %1365 = vmatpush3.bf16.msra.mxu1 %v1435_v53 }
 0x331   :  { %v557_v11 = vpop.f32.mrb[4].mxu0  ;;  %v669_v14 = vpop.f32.mrb[4].mxu1 }
 0x332   :  { %v670_v15 = vadd.f32 %v1187_v9, %v669_v14  ;;  %v1322_v16 = vpop.f32.mrb[5].mxu0  ;;  %v1342_v17 = vpop.f32.mrb[5].mxu1  ;;  %v558_v32 = vadd.f32 %v1178_v30, %v557_v11  ;;  %v1456_v14 = vld [vmem:[#allocation13 + $0x64] ss:$8 sps:$4 sm:$0xff]  }
 0x333   :  { %v560_v19 = vpop.f32.mrb[6].mxu0  ;;  %v672_v20 = vpop.f32.mrb[6].mxu1  ;;  %v1459_v16 = vld [vmem:[#allocation13 + $0x74] ss:$8 sps:$4 sm:$0xff]   ;;  %v1457_v17 = vld [vmem:[#allocation13 + $0x70] ss:$8 sps:$4 sm:$0xff]  }
 0x334   :  { %v676_v21 = vmul.f32 1.442695, %v670_v15  ;;  %v673_v22 = vadd.f32 %v1187_v9, %v672_v20  ;;  %v1323_v23 = vpop.f32.mrb[7].mxu0  ;;  %v1343_v24 = vpop.f32.mrb[7].mxu1  ;;  %v688_v25 = vsub.f32 %v686_v10, %v670_v15  ;;  %v561_v35 = vadd.f32 %v1178_v30, %v560_v19  ;;  %v1454_v15 = vld [vmem:[#allocation13 + $0x60] ss:$8 sps:$4 sm:$0xff]  }
 0x335   :  { %v1199_v19 = vld [vmem:[%s2090_s13] ss:$0 sm:$0xff] }
 0x336   :  { %1460 = vpow2.f32 %v676_v21  ;;  %v678_v26 = vmul.f32 1.442695, %v673_v22  ;;  %v691_v27 = vsel %vm690_vm1, %v688_v25, 0.0  ;;  %v689_v28 = vsub.f32 %v687_v18, %v673_v22 }
 0x337   :  { %692 = vadd.xlane.f32.xlu1 %v691_v27  ;;  %v1679_v18 = vmov 0  }
 0x338   :  { %1462 = vpow2.f32 %v678_v26  ;;  %v694_v29 = vsel %vm690_vm1, %v689_v28, 0.0 }
 0x33b   :  { %695 = vadd.xlane.f32.xlu1 %v694_v29  ;;  %v903_v29 = vlaneseq }
 0x33d   :  { %v904_v30 = vshrl.u32 %v903_v29, 7 }
 0x340   :  { %v1461_v31 = vpop.eup %1460 }
 0x341   :  { %v680_v33 = vmul.f32 %v1461_v31, %v146_v5  ;;  %v1036_v31 = vunpack.c.l.bf16 %v1906_v12 }
 0x342   :  { %v1463_v34 = vpop.eup %1462 }
 0x343   :  { %v682_v36 = vadd.f32 %v680_v33, %v558_v32  ;;  %v681_v37 = vmul.f32 %v1463_v34, %v147_v6  ;;  %v1037_v32 = vunpack.c.h.bf16 %v1906_v12  ;;  %v905_v33 = vsub.s32 0, %v904_v30 }
 0x344   :  { %v1038_v34 = vunpack.c.l.bf16 %v1911_v13 }
 0x345   :  { %v683_v38 = vadd.f32 %v681_v37, %v561_v35  ;;  %v697_v39 = vmul.f32 %v682_v36, %v682_v36  ;;  %v901_v35 = vld [vmem:[%s2092_s15] sm:$0x3]  ;;  %v1039_v37 = vunpack.c.h.bf16 %v1911_v13  ;;  %s1680_s15 = smov [#allocation14]  }
 0x346   :  { %s1138_s12 = sshll.u32 %s1680_s15, 4  ;;  %s1139_s12 = int_to_ptr.vmem [resolvable:$true] %s1138_s12 }
 0x347   :  { %v707_v40 = vpack.c.bf16 %v683_v38, %v682_v36  ;;  %v698_v41 = vmul.f32 %v683_v38, %v683_v38  ;;  %v699_v42 = vmul.f32 -0.5, %v697_v39  ;;  %v909_v36 = vsub.s32 1, %v904_v30  ;;  %s1634_s18 = scalar_lea.vmem %s1139_s12, 16  ;;  %s1638_s26 = scalar_lea.vmem %s1139_s12, 32 }
 0x348   :  { %v1040_v38 = vmul.f32 2.0, %v1036_v31  ;;  %v1041_v39 = vmul.f32 2.0, %v1037_v32  ;;  %p1635_p0 = scmp.ne.s32.totalorder %s1139_s12, %s1634_s18  ;;  %p1639_p1 = scmp.lt.s32.totalorder %s1139_s12, %s1139_s12 }
 0x349   :  { %1347 = vmatmul.mubr.msk.bf16.vlgmr.msra.gmra.mrb[8].mxu0 %vm690_vm1, %v707_v40  ;;  %v700_v43 = vmul.f32 -0.5, %v698_v41  ;;  %v2025_v44 = vsel %vm690_vm1, %v699_v42, 0.0  ;;  %v906_v40 = vrot.slane %v901_v35, %v905_v33  ;;  %v1042_v41 = vmul.f32 2.0, %v1038_v34  ;;  %p1640_p2 = scmp.lt.s32.totalorder %s1638_s26, %s1634_s18 }
 0x34a   :  { %994 = vmatpush1.bf16.msra.mxu0 %v1436_v54  ;;  %1025 = vmatprep.mubr.bf16.mxu0 %v1679_v18  ;;  %v910_v42 = vrot.slane %v901_v35, %v909_v36  ;;  %v1045_v47 = vsub.f32 1.0, %v1041_v39 }
 0x34b   :  { %v704_v45 = vsel %vm690_vm1, %v700_v43, 0.0  ;;  %995 = vmatprep.subr.bf16.mxu0 %v1441_v56  ;;  %v1043_v43 = vmul.f32 2.0, %v1039_v37  ;;  %v1046_v49 = vsub.f32 1.0, %v1042_v41  ;;  %p1641_p3 = por %p1640_p2, %p1639_p1 }
 0x34c   :  { %705 = vadd.xlane.f32.xlu1 %v704_v45  ;;  %v1044_v45 = vsub.f32 1.0, %v1040_v38 }
 0x34d   :  { %v1047_v52 = vsub.f32 1.0, %v1043_v43  ;;  %p1642_p4 = pnand %p1641_p3, %p1635_p0 }
 0x34e   :  { %996 = vmatpush1.bf16.msra.mxu0 %v1439_v57 }
 0x34f   :  { %997 = vmatprep.subr.bf16.mxu0 %v1444_v58 }
 0x352   :  { %998 = vmatpush1.bf16.msra.mxu0 %v1442_v59 }
 0x353   :  { %999 = vmatprep.subr.bf16.mxu0 %v1447_v60 }
 0x356   :  { %1000 = vmatpush1.bf16.msra.mxu0 %v1445_v61 }
 0x357   :  { %1001 = vmatprep.subr.bf16.mxu0 %v1450_v62 }
 0x35a   :  { %1002 = vmatpush1.bf16.msra.mxu0 %v1448_v0 }
 0x35b   :  { %1003 = vmatprep.subr.bf16.mxu0 %v1453_v63 }
 0x35e   :  { %1004 = vmatpush1.bf16.msra.mxu0 %v1451_v1 }
 0x35f   :  { %1005 = vmatprep.subr.bf16.mxu0 %v1456_v14 }
 0x362   :  { %1006 = vmatpush1.bf16.msra.mxu0 %v1454_v15 }
 0x363   :  { %1007 = vmatprep.subr.bf16.mxu0 %v1459_v16 }
 0x366   :  { %1008 = vmatpush1.bf16.msra.mxu0 %v1457_v17 }
 0x41c   :  { %v760_v3 = vpop.f32.mrb[8].mxu0 }
 0x41d   :  { %v761_v4 = vadd.f32 %v1196_v2, %v760_v3  ;;  %v1348_v5 = vpop.f32.mrb[9].mxu0 }
 0x41e   :  { %v763_v6 = vpop.f32.mrb[10].mxu0 }
 0x41f   :  { %v764_v7 = vadd.f32 %v1196_v2, %v763_v6  ;;  %v1349_v8 = vpop.f32.mrb[11].mxu0  ;;  %v767_v9 = vmax.f32 %v761_v4, 0.0 }
 0x421   :  { %v768_v10 = vmax.f32 %v764_v7, 0.0 }
 0x423   :  { %v769_v11 = vpack.c.bf16 %v768_v10, %v767_v9 }
 0x425   :  { %1367 = vmatmul.mubr.bf16.vlgmr.msra.gmra.mrb[8].mxu1 %v769_v11 }
 0x4f8   :  { %v875_v20 = vpop.f32.mrb[8].mxu1 }
 0x4f9   :  { %v876_v21 = vadd.f32 %v1199_v19, %v875_v20  ;;  %v1368_v22 = vpop.f32.mrb[9].mxu1 }
 0x4fa   :  { %v878_v23 = vpop.f32.mrb[10].mxu1 }
 0x4fb   :  { %v879_v24 = vadd.f32 %v1199_v19, %v878_v23  ;;  %v1369_v25 = vpop.f32.mrb[11].mxu1  ;;  %v882_v26 = vmax.f32 %v876_v21, 0.0 }
 0x4fd   :  { %v883_v27 = vmax.f32 %v879_v24, 0.0 }
 0x4ff   :  { %v884_v28 = vpack.c.bf16 %v883_v27, %v882_v26 }
 0x501   :  { %1026 = vmatmul.mubr.bf16.vlgmr.msra.gmra.mrb[12].mxu0 %v884_v28 }
 0x5d4   :  { %v1027_v46 = vpop.f32.mrb[12].mxu0 }
 0x5d5   :  { %v1028_v12 = vadd.f32 %v1027_v46, %v906_v40  ;;  %v1029_v48 = vpop.f32.mrb[13].mxu0 }
 0x5d6   :  { %v1030_v50 = vadd.f32 %v1029_v48, %v910_v42  ;;  %v1031_v51 = vpop.f32.mrb[14].mxu0 }
 0x5d7   :  { %v2048_v53 = vmul.f32 %v1044_v45, %v1028_v12  ;;  %v1032_v54 = vadd.f32 %v1031_v51, %v906_v40  ;;  %v1033_v55 = vpop.f32.mrb[15].mxu0 }
 0x5d8   :  { %v2050_v13 = vmul.f32 %v1045_v47, %v1030_v50  ;;  %v1034_v56 = vadd.f32 %v1033_v55, %v910_v42  ;;  %v693_v55 = vpop.xlane.xlu1 %692 }
 0x5d9   :  { %v1056_v57 = vand.u32 2147483647, %v2048_v53  ;;  %v2053_v58 = vmul.f32 %v1046_v49, %v1032_v54  ;;  %v1052_v27 = vmax.f32 %v2048_v53, 0.0 }
 0x5da   :  { %v1057_v59 = vand.u32 2147483647, %v2050_v13  ;;  %v2056_v60 = vmul.f32 %v1047_v52, %v1034_v56  ;;  %v1053_v30 = vmax.f32 %v2050_v13, 0.0 }
 0x5db   :  { %v1060_v61 = vsub.f32 0.0, %v1056_v57  ;;  %v1058_v62 = vand.u32 2147483647, %v2053_v58  ;;  %v1054_v42 = vmax.f32 %v2053_v58, 0.0 }
 0x5dc   :  { %v1061_v0 = vsub.f32 0.0, %v1057_v59  ;;  %v1059_v63 = vand.u32 2147483647, %v2056_v60  ;;  %v1055_v49 = vmax.f32 %v2056_v60, 0.0  ;;  %v696_v57 = vpop.xlane.xlu1 %695 }
 0x5dd   :  { %v1064_v1 = vmul.f32 1.442695, %v1060_v61  ;;  %v1062_v2 = vsub.f32 0.0, %v1058_v62 }
 0x5de   :  { %v1066_v3 = vmul.f32 1.442695, %v1061_v0  ;;  %v1063_v4 = vsub.f32 0.0, %v1059_v63 }
 0x5df   :  { %1464 = vpow2.f32 %v1064_v1  ;;  %v1068_v5 = vmul.f32 1.442695, %v1062_v2 }
 0x5e0   :  { %1466 = vpow2.f32 %v1066_v3  ;;  %v1070_v6 = vmul.f32 1.442695, %v1063_v4  ;;  %v706_v0 = vpop.xlane.xlu1 %705 }
 0x5e1   :  { %1468 = vpow2.f32 %v1068_v5 }
 0x5e2   :  { %1470 = vpow2.f32 %v1070_v6 }
 0x5e9   :  { %v1465_v7 = vpop.eup %1464 }
 0x5ea   :  { %v1467_v8 = vpop.eup %1466  ;;  %v1072_v9 = vadd.f32 1.0, %v1465_v7  ;;  %v1075_v17 = vmul.f32 -0.5, %v1465_v7  ;;  %v1078_v22 = vand.u32 2147483647, %v1465_v7 }
 0x5eb   :  { %v1469_v10 = vpop.eup %1468  ;;  %v1081_v11 = vadd.f32 1.0, %v1467_v8  ;;  %v1084_v18 = vmul.f32 -0.5, %v1467_v8  ;;  %v1087_v24 = vand.u32 2147483647, %v1467_v8 }
 0x5ec   :  { %v1471_v14 = vpop.eup %1470  ;;  %1472 = vlog2.f32 %v1072_v9  ;;  %v1090_v15 = vadd.f32 1.0, %v1469_v10  ;;  %v1093_v19 = vmul.f32 -0.5, %v1469_v10  ;;  %v1076_v20 = vadd.f32 1.0, %v1075_v17 }
 0x5ed   :  { %1474 = vlog2.f32 %v1081_v11  ;;  %v1099_v16 = vadd.f32 1.0, %v1471_v14  ;;  %v1102_v21 = vmul.f32 -0.5, %v1471_v14  ;;  %v1085_v23 = vadd.f32 1.0, %v1084_v18 }
 0x5ee   :  { %1476 = vlog2.f32 %v1090_v15  ;;  %v1094_v25 = vadd.f32 1.0, %v1093_v19  ;;  %v1096_v28 = vand.u32 2147483647, %v1469_v10  ;;  %v1077_v32 = vmul.f32 %v1465_v7, %v1076_v20 }
 0x5ef   :  { %1478 = vlog2.f32 %v1099_v16  ;;  %v1103_v33 = vadd.f32 1.0, %v1102_v21  ;;  %vm1079_vm2 = vcmp.lt.f32.partialorder %v1078_v22, 0.0004427343  ;;  %v1086_v36 = vmul.f32 %v1467_v8, %v1085_v23 }
 0x5f0   :  { %v1105_v37 = vand.u32 2147483647, %v1471_v14  ;;  %vm1088_vm3 = vcmp.lt.f32.partialorder %v1087_v24, 0.0004427343  ;;  %v1095_v40 = vmul.f32 %v1469_v10, %v1094_v25  ;;  %vm1097_vm4 = vcmp.lt.f32.partialorder %v1096_v28, 0.0004427343 }
 0x5f1   :  { %v1104_v48 = vmul.f32 %v1471_v14, %v1103_v33 }
 0x5f2   :  { %vm1106_vm5 = vcmp.lt.f32.partialorder %v1105_v37, 0.0004427343 }
 0x5f6   :  { %v1473_v26 = vpop.eup %1472 }
 0x5f7   :  { %v1475_v29 = vpop.eup %1474  ;;  %v1074_v31 = vmul.f32 0.6931472, %v1473_v26 }
 0x5f8   :  { %v1477_v34 = vpop.eup %1476  ;;  %v1083_v35 = vmul.f32 0.6931472, %v1475_v29 }
 0x5f9   :  { %v1080_v38 = vsel %vm1079_vm2, %v1077_v32, %v1074_v31  ;;  %v1092_v39 = vmul.f32 0.6931472, %v1477_v34  ;;  %v1479_v41 = vpop.eup %1478 }
 0x5fa   :  { %v1089_v43 = vsel %vm1088_vm3, %v1086_v36, %v1083_v35  ;;  %v1108_v45 = vadd.f32 %v1080_v38, %v1052_v27  ;;  %v1101_v12 = vmul.f32 0.6931472, %v1479_v41 }
 0x5fb   :  { %v1109_v46 = vadd.f32 %v1089_v43, %v1053_v30  ;;  %v1098_v47 = vsel %vm1097_vm4, %v1095_v40, %v1092_v39 }
 0x5fc   :  { %v1110_v50 = vadd.f32 %v1098_v47, %v1054_v42  ;;  %v1107_v52 = vsel %vm1106_vm5, %v1104_v48, %v1101_v12 }
 0x5fd   :  { %v1112_v51 = vadd.f32 %v1109_v46, %v1108_v45  ;;  %v1111_v53 = vadd.f32 %v1107_v52, %v1055_v49 }
 0x5ff   :  { %1113 = vadd.xlane.f32.xlu0 %v1112_v51  ;;  %v1115_v54 = vadd.f32 %v1111_v53, %v1110_v50 }
 0x603   :  { %1116 = vadd.xlane.f32.xlu0 %v1115_v54 }
 0x607   :  { %702 = vadd.xlane.f32.xlu0 %v2025_v44 }
 0x68c   :  { %v1114_v13 = vpop.xlane.xlu0 %1113 }
 0x68d   :  { %v1118_v56 = vsub.f32 0.0, %v1114_v13 }
 0x68f   :  { %v1120_v62 = vsub.f32 %v1118_v56, %v693_v55 }
 0x690   :  { %v1117_v58 = vpop.xlane.xlu0 %1116 }
 0x691   :  { %v1119_v59 = vsub.f32 0.0, %v1117_v58 }
 0x693   :  { %v1121_v61 = vsub.f32 %v1119_v59, %v696_v57 }
 0x694   :  { %v703_v60 = vpop.xlane.xlu0 %702 }
 0x695   :  { %v1123_v63 = vadd.f32 %v1121_v61, %v706_v0  ;;  %v1122_v1 = vadd.f32 %v1120_v62, %v703_v60 }
 0x697   :  { %v1124_v2 = vadd.f32 %v1123_v63, %v1122_v1 }
 0x699   :  { %v1125_v3 = vrot.slane %v1124_v2, 4 }
 0x69b   :  { %v1126_v4 = vadd.f32 %v1125_v3, %v1124_v2 }
 0x69d   :  { %v1127_v5 = vrot.slane %v1126_v4, 2 }
 0x69f   :  { %v1128_v6 = vadd.f32 %v1127_v5, %v1126_v4 }
 0x6a1   :  { %v1129_v44 = vrot.slane %v1128_v6, 1 }
 0x6a3   :  { %v1130_v7 = vadd.f32 %v1129_v44, %v1128_v6 }
 0x6a5   :  { %1131 = vst [vmem:[#allocation14] sm:$0x1] %v1130_v7 }
 0x6a6   :  { %1645 = shalt.err (!%p1642_p4)
}
 0x6a7   :  { %s1646_s30 = scalar_lea.hbm %s2093_s16, 16 }
 0x6a8   :  { %p1647_p5 = scmp.ne.s32.totalorder %s2093_s16, %s1646_s30  ;;  %p1650_p6 = scmp.lt.u32.totalorder %s1646_s30, %s2093_s16 }
 0x6aa   :  { %p1652_p7 = pnand %p1650_p6, %p1647_p5 }
 0x6ac   :  { %1655 = shalt.err (!%p1652_p7)
}
 0x6ad   :  { %1141 = dma.vmem_to_hbm [thread:$0]  %s1139_s12, 16, %s2093_s16, [#allocation4]  }
 0x6ae   :  { %1664 = dma.done.wait [#allocation4], 16  }
 0x6af   :  { %1665 = vsyncadd [#allocation4], 4294967280 }
 0x6b0   :  { %1145 = vsyncpa [#allocation3], 1 }
 0x6b1   :  { %1146 = vsyncpa [#allocation6], 1 }
 0x6b2   :  { %1147 = vsyncpa [#allocation9], 1 }
 0x6b3   :  { %1148 = vsyncpa [#allocation12], 1 }
 0x6b4   :  { %1149 = vsyncpa [#allocation4], 1 }

</bundles_post_ra>
